<compile_context>
chip_gen: v7x
topology: tpu7x:2x2x1
jax: 0.10.0
libtpu: 0.0.40
codegen_flags: <defaults>
</compile_context>

<pallas_src>
import jax
import jax.numpy as jnp
from jax.experimental import pallas as pl
from jax.experimental.pallas import tpu as pltpu


def _round_up(a: int, m: int) -> int:
    return (a + m - 1) // m * m


def ffnn_kernel(x_ref, w1_ref, b1_ref, w2_ref, b2_ref, o_ref):
    # x_ref:  (TILE_N, D_in_p)   compute dtype (bf16 or f32)
    # w1_ref: (D_in_p, H_p)      compute dtype
    # b1_ref: (1, H_p)           f32
    # w2_ref: (H_p, D_out_p)     compute dtype
    # b2_ref: (1, D_out_p)       f32 (pad lanes = -1e30)
    # o_ref:  (TILE_N, D_out_p)  f32
    x = x_ref[...]

    # l1: x @ W1 + b1 (no activation in the reference module); f32 accumulation.
    h = jnp.dot(x, w1_ref[...], preferred_element_type=jnp.float32) + b1_ref[...]

    # dropout (eval mode) -> identity

    # l2: h @ W2 + b2; feed the MXU in the compute dtype, accumulate in f32.
    h = h.astype(w2_ref.dtype)
    z = jnp.dot(h, w2_ref[...], preferred_element_type=jnp.float32) + b2_ref[...]

    # Softmax over the last dim (== nn.Softmax(dim=1) on the flattened 2-D tensor).
    # Pad lanes carry a -1e30 bias so exp() underflows to exactly 0 there.
    z = z - jnp.max(z, axis=-1, keepdims=True)
    e = jnp.exp(z)
    denom = jnp.sum(e, axis=-1, keepdims=True)
    o_ref[...] = (e * pl.reciprocal(denom, approx=True)).astype(o_ref.dtype)


def ffnn_forward(x, w1, b1, w2, b2, *, tile_n=512, compute_dtype=jnp.bfloat16):
    """x: (d1, d2, input_dim) float32. Returns (d1, d2, output_dim) softmax probs (f32)."""
    d1, d2, d_in = x.shape
    n = d1 * d2
    hidden = w1.shape[1]
    d_out = w2.shape[1]

    LANE = 128
    d_in_p = _round_up(d_in, LANE)
    hid_p = _round_up(hidden, LANE)
    d_out_p = _round_up(d_out, LANE)

    # Row tile: multiple of 8, capped at tile_n, no bigger than needed.
    tile_n = max(8, min(tile_n, _round_up(n, 8)))
    n_p = _round_up(n, tile_n)

    # Zero-pad to MXU-friendly shapes (pads are mathematically inert), cast matmul
    # operands to the compute dtype (bf16 by default), keep biases in f32.
    x2d = x.reshape(n, d_in)
    x2d = jnp.pad(x2d, ((0, n_p - n), (0, d_in_p - d_in))).astype(compute_dtype)
    w1_p = jnp.pad(w1, ((0, d_in_p - d_in), (0, hid_p - hidden))).astype(compute_dtype)
    b1_p = jnp.pad(b1.astype(jnp.float32), (0, hid_p - hidden)).reshape(1, hid_p)
    w2_p = jnp.pad(w2, ((0, hid_p - hidden), (0, d_out_p - d_out))).astype(compute_dtype)
    # Pad output lanes with a very negative bias so softmax ignores them.
    b2_p = jnp.concatenate(
        [b2.astype(jnp.float32),
         jnp.full((d_out_p - d_out,), -1e30, dtype=jnp.float32)]
    ).reshape(1, d_out_p)

    grid = (n_p // tile_n,)

    out = pl.pallas_call(
        ffnn_kernel,
        out_shape=jax.ShapeDtypeStruct((n_p, d_out_p), jnp.float32),
        grid_spec=pltpu.PrefetchScalarGridSpec(
            num_scalar_prefetch=0,
            grid=grid,
            in_specs=[
                pl.BlockSpec((tile_n, d_in_p), lambda i: (i, 0)),   # x: tiled over rows
                pl.BlockSpec((d_in_p, hid_p), lambda i: (0, 0)),    # W1: VMEM-resident
                pl.BlockSpec((1, hid_p), lambda i: (0, 0)),         # b1
                pl.BlockSpec((hid_p, d_out_p), lambda i: (0, 0)),   # W2: VMEM-resident
                pl.BlockSpec((1, d_out_p), lambda i: (0, 0)),       # b2
            ],
            out_specs=pl.BlockSpec((tile_n, d_out_p), lambda i: (i, 0)),
        ),
        compiler_params=pltpu.CompilerParams(
            dimension_semantics=("parallel",),        # rows are independent -> megacore
            vmem_limit_bytes=32 * 1024 * 1024,        # safe on v5e/v6e/v7x for these tiles
        ),
    )(x2d, w1_p, b1_p, w2_p, b2_p)

    # Drop row/lane padding and restore the (d1, d2, d_out) view.
    return out[:n, :d_out].reshape(d1, d2, d_out)


if __name__ == "__main__":
    # Small shapes consistent with the module: output_dim must be 10
    # (forward reshapes to (d1, d2, 10)).
    d1, d2 = 2, 8          # batch / sequence dims
    input_dim = 32
    hidden = 32
    output_dim = 10

    key = jax.random.PRNGKey(0)
    kx, kw1, kb1, kw2, kb2 = jax.random.split(key, 5)

    x = jax.random.normal(kx, (d1, d2, input_dim), dtype=jnp.float32)

    # Deterministic parameter init (uniform like torch.nn.Linear's default range).
    lim1 = 1.0 / (input_dim ** 0.5)
    lim2 = 1.0 / (hidden ** 0.5)
    w1 = jax.random.uniform(kw1, (input_dim, hidden), jnp.float32, -lim1, lim1)
    b1 = jax.random.uniform(kb1, (hidden,), jnp.float32, -lim1, lim1)
    w2 = jax.random.uniform(kw2, (hidden, output_dim), jnp.float32, -lim2, lim2)
    b2 = jax.random.uniform(kb2, (output_dim,), jnp.float32, -lim2, lim2)

    out = ffnn_forward(x, w1, b1, w2, b2)
    out = jax.block_until_ready(out)

    # Reference in plain JAX (f32 math). Kernel uses bf16 MXU operands + approx
    # reciprocal, so compare with a correspondingly loose (but tight-for-softmax)
    # tolerance.
    x2d = x.reshape(-1, input_dim)
    ref = jax.nn.softmax((x2d @ w1 + b1) @ w2 + b2, axis=1).reshape(d1, d2, output_dim)

    assert out.shape == (d1, d2, output_dim)
    assert jnp.all(jnp.isfinite(out))
    assert jnp.allclose(out, ref, atol=5e-3, rtol=1e-2)

    print("KERNEL_OK")
</pallas_src>

<mosaic_0001>
module attributes {stable_mosaic.version = 11 : i64} {
  func.func @ffnn_kernel(%arg0: i32, %arg1: memref<16x128xbf16, #tpu.memory_space<vmem>>, %arg2: memref<128x128xbf16, #tpu.memory_space<vmem>>, %arg3: memref<1x128xf32, #tpu.memory_space<vmem>>, %arg4: memref<128x128xbf16, #tpu.memory_space<vmem>>, %arg5: memref<1x128xf32, #tpu.memory_space<vmem>>, %arg6: memref<16x128xf32, #tpu.memory_space<vmem>>) attributes {dimension_semantics = [#tpu.dimension_semantics<parallel>], iteration_bounds = array<i64: 1>, scalar_prefetch = 0 : i64, scratch_operands = 0 : i64, tpu.core_type = #tpu.core_type<tc>, window_params = [{transform_indices = @transform_0, window_bounds = array<i64: 16, 128>}, {pipeline_mode = #tpu.pipeline_mode<synchronous>, transform_indices = @transform_1, window_bounds = array<i64: 128, 128>}, {pipeline_mode = #tpu.pipeline_mode<synchronous>, transform_indices = @transform_2, window_bounds = array<i64: 1, 128>}, {pipeline_mode = #tpu.pipeline_mode<synchronous>, transform_indices = @transform_3, window_bounds = array<i64: 128, 128>}, {pipeline_mode = #tpu.pipeline_mode<synchronous>, transform_indices = @transform_4, window_bounds = array<i64: 1, 128>}, {transform_indices = @transform_5, window_bounds = array<i64: 16, 128>}]} {
    %c0 = arith.constant 0 : index
    %c0_0 = arith.constant 0 : index
    %0 = vector.load %arg1[%c0, %c0_0] : memref<16x128xbf16, #tpu.memory_space<vmem>>, vector<16x128xbf16>
    %c0_1 = arith.constant 0 : index
    %c0_2 = arith.constant 0 : index
    %1 = vector.load %arg2[%c0_1, %c0_2] : memref<128x128xbf16, #tpu.memory_space<vmem>>, vector<128x128xbf16>
    %cst = arith.constant dense<0.000000e+00> : vector<16x128xf32>
    %2 = tpu.matmul %0, %1, %cst {dimension_numbers = #tpu.dot_dimension_numbers<[1], [0], [0], [1], [0, 0, 1, 1], [], []>} : vector<16x128xbf16>, vector<128x128xbf16>, vector<16x128xf32> -> vector<16x128xf32>
    %c0_3 = arith.constant 0 : index
    %c0_4 = arith.constant 0 : index
    %3 = vector.load %arg3[%c0_3, %c0_4] : memref<1x128xf32, #tpu.memory_space<vmem>>, vector<1x128xf32>
    %4 = vector.broadcast %3 : vector<1x128xf32> to vector<16x128xf32>
    %5 = arith.addf %2, %4 : vector<16x128xf32>
    %6 = arith.truncf %5 : vector<16x128xf32> to vector<16x128xbf16>
    %c0_5 = arith.constant 0 : index
    %c0_6 = arith.constant 0 : index
    %7 = vector.load %arg4[%c0_5, %c0_6] : memref<128x128xbf16, #tpu.memory_space<vmem>>, vector<128x128xbf16>
    %cst_7 = arith.constant dense<0.000000e+00> : vector<16x128xf32>
    %8 = tpu.matmul %6, %7, %cst_7 {dimension_numbers = #tpu.dot_dimension_numbers<[1], [0], [0], [1], [0, 0, 1, 1], [], []>} : vector<16x128xbf16>, vector<128x128xbf16>, vector<16x128xf32> -> vector<16x128xf32>
    %c0_8 = arith.constant 0 : index
    %c0_9 = arith.constant 0 : index
    %9 = vector.load %arg5[%c0_8, %c0_9] : memref<1x128xf32, #tpu.memory_space<vmem>>, vector<1x128xf32>
    %10 = vector.broadcast %9 : vector<1x128xf32> to vector<16x128xf32>
    %11 = arith.addf %8, %10 : vector<16x128xf32>
    %cst_10 = arith.constant dense<0xFF800000> : vector<16xf32>
    %12 = vector.multi_reduction <maximumf>, %11, %cst_10 [1] : vector<16x128xf32> to vector<16xf32>
    %13 = vector.shape_cast %12 : vector<16xf32> to vector<16x1xf32>
    %14 = vector.broadcast %13 : vector<16x1xf32> to vector<16x128xf32>
    %15 = arith.subf %11, %14 : vector<16x128xf32>
    %16 = math.exp %15 : vector<16x128xf32>
    %cst_11 = arith.constant dense<0.000000e+00> : vector<16xf32>
    %17 = vector.multi_reduction <add>, %16, %cst_11 [1] : vector<16x128xf32> to vector<16xf32>
    %18 = vector.shape_cast %17 : vector<16xf32> to vector<16x1xf32>
    %19 = tpu.reciprocal %18 {approx = true} : vector<16x1xf32> -> vector<16x1xf32>
    %20 = vector.broadcast %19 : vector<16x1xf32> to vector<16x128xf32>
    %21 = arith.mulf %16, %20 : vector<16x128xf32>
    %c0_12 = arith.constant 0 : index
    %c0_13 = arith.constant 0 : index
    %22 = vector.load %arg6[%c0_12, %c0_13] : memref<16x128xf32, #tpu.memory_space<vmem>>, vector<16x128xf32>
    tpu.vector_store %arg6[%c0_12, %c0_13], %21 {strides = array<i32>} : memref<16x128xf32, #tpu.memory_space<vmem>>, vector<16x128xf32>,
    return
  }
  func.func @transform_0(%arg0: i32) -> (i32, i32) {
    %c0_i32 = arith.constant 0 : i32
    %c0_i32_0 = arith.constant 0 : i32
    return %arg0, %c0_i32 : i32, i32
  }
  func.func @transform_1(%arg0: i32) -> (i32, i32) {
    %c0_i32 = arith.constant 0 : i32
    %c0_i32_0 = arith.constant 0 : i32
    %c0_i32_1 = arith.constant 0 : i32
    return %c0_i32, %c0_i32_0 : i32, i32
  }
  func.func @transform_2(%arg0: i32) -> (i32, i32) {
    %c0_i32 = arith.constant 0 : i32
    %c0_i32_0 = arith.constant 0 : i32
    %c0_i32_1 = arith.constant 0 : i32
    return %c0_i32, %c0_i32_0 : i32, i32
  }
  func.func @transform_3(%arg0: i32) -> (i32, i32) {
    %c0_i32 = arith.constant 0 : i32
    %c0_i32_0 = arith.constant 0 : i32
    %c0_i32_1 = arith.constant 0 : i32
    return %c0_i32, %c0_i32_0 : i32, i32
  }
  func.func @transform_4(%arg0: i32) -> (i32, i32) {
    %c0_i32 = arith.constant 0 : i32
    %c0_i32_0 = arith.constant 0 : i32
    %c0_i32_1 = arith.constant 0 : i32
    return %c0_i32, %c0_i32_0 : i32, i32
  }
  func.func @transform_5(%arg0: i32) -> (i32, i32) {
    %c0_i32 = arith.constant 0 : i32
    %c0_i32_0 = arith.constant 0 : i32
    return %arg0, %c0_i32 : i32, i32
  }
}

</mosaic_0001>

<bundles_post_ra>
// kernel: tpu_custom_call.1
= control target key start
LH: loop header
LB: loop body
LE: loop exit
PB: predicated region body
PF: predicated region fallthrough
CT: control target
= control target key end

     0   :  { %10 = vsyncpa [#allocation3], 0  ;;  %s650_s0 = inlined_call_operand.hbm [shape: bf16[16,128], index: 0, kind: input, shape index: {}]   ;;  %s651_s1 = inlined_call_operand.hbm [shape: bf16[128,128], index: 1, kind: input, shape index: {}]   ;;  %s652_s2 = inlined_call_operand.vmem [shape: f32[1,128], index: 2, kind: input, shape index: {}]   ;;  %s653_s3 = inlined_call_operand.hbm [shape: bf16[128,128], index: 3, kind: input, shape index: {}]   ;;  %s654_s4 = inlined_call_operand.vmem [shape: f32[1,128], index: 4, kind: input, shape index: {}]   ;;  %s655_s5 = inlined_call_operand.hbm [shape: f32[16,128], index: 5, kind: output, shape index: {}]  }
   0x1   :  { %11 = vsyncpa [#allocation6], 0 }
   0x2   :  { %12 = vsyncpa [#allocation4], 0  ;;  %s540_s18 = smov [#allocation5]   ;;  %s541_s20 = smov [#allocation2]  }
   0x3   :  { %s30_s19 = sshll.u32 %s540_s18, 4  ;;  %s18_s21 = sshll.u32 %s541_s20, 4  ;;  %s31_s19 = int_to_ptr.vmem [resolvable:$true] %s30_s19  ;;  %s580_s21 = int_to_ptr.vmem [resolvable:$true] %s18_s21 }
   0x4   :  { %s446_s24 = scalar_lea.hbm %s651_s1, 1024 }
   0x5   :  { %p447_p0 = scmp.ne.s32.totalorder %s651_s1, %s446_s24  ;;  %p450_p1 = scmp.lt.u32.totalorder %s446_s24, %s651_s1 }
   0x7   :  { %p452_p2 = pnand %p450_p1, %p447_p0 }
   0x9   :  { %455 = shalt.err (!%p452_p2)
}
   0xa   :  { %s456_s29 = scalar_lea.vmem %s31_s19, 1024  ;;  %p461_p4 = scmp.lt.s32.totalorder %s31_s19, %s31_s19 }
   0xb   :  { %p457_p3 = scmp.ne.s32.totalorder %s31_s19, %s456_s29  ;;  %p462_p5 = scmp.lt.s32.totalorder %s456_s29, %s456_s29 }
   0xd   :  { %p463_p6 = por %p462_p5, %p461_p4 }
   0xf   :  { %p464_p7 = pnand %p463_p6, %p457_p3 }
  0x11   :  { %467 = shalt.err (!%p464_p7)
}
  0x12   :  { %s542_s30 = smov 64   ;;  %s543_s6 = smov 4  }
  0x13   :  { %36 = dma.hbm_to_vmem [thread:$0]  %s651_s1, 1024, %s31_s19, [#allocation6], %s542_s30, %s542_s30, %s543_s6  }
  0x14   :  { %s468_s11 = scalar_lea.hbm %s650_s0, 128 }
  0x15   :  { %p469_p8 = scmp.ne.s32.totalorder %s650_s0, %s468_s11  ;;  %p472_p9 = scmp.lt.u32.totalorder %s468_s11, %s650_s0 }
  0x17   :  { %p474_p10 = pnand %p472_p9, %p469_p8 }
  0x19   :  { %477 = shalt.err (!%p474_p10)
}
  0x1a   :  { %s478_s16 = scalar_lea.vmem %s580_s21, 128  ;;  %p483_p12 = scmp.lt.s32.totalorder %s580_s21, %s580_s21 }
  0x1b   :  { %p479_p11 = scmp.ne.s32.totalorder %s580_s21, %s478_s16  ;;  %p484_p13 = scmp.lt.s32.totalorder %s478_s16, %s478_s16 }
  0x1d   :  { %p485_p0 = por %p484_p13, %p483_p12 }
  0x1f   :  { %p486_p1 = pnand %p485_p0, %p479_p11 }
  0x21   :  { %489 = shalt.err (!%p486_p1)
}
  0x22   :  { %24 = dma.hbm_to_vmem [thread:$0]  %s650_s0, 128, %s580_s21, [#allocation3], %s542_s30, %s542_s30, %s543_s6  }
  0x23   :  { %s544_s18 = smov [#allocation7]   ;;  %s490_s23 = scalar_lea.hbm %s653_s3, 1024 }
  0x24   :  { %s44_s19 = sshll.u32 %s544_s18, 4  ;;  %p491_p2 = scmp.ne.s32.totalorder %s653_s3, %s490_s23  ;;  %s45_s19 = int_to_ptr.vmem [resolvable:$true] %s44_s19 }
  0x25   :  { %p494_p3 = scmp.lt.u32.totalorder %s490_s23, %s653_s3 }
  0x27   :  { %p496_p4 = pnand %p494_p3, %p491_p2 }
  0x29   :  { %499 = shalt.err (!%p496_p4)
}
  0x2a   :  { %s500_s28 = scalar_lea.vmem %s45_s19, 1024  ;;  %p505_p6 = scmp.lt.s32.totalorder %s45_s19, %s45_s19 }
  0x2b   :  { %p501_p5 = scmp.ne.s32.totalorder %s45_s19, %s500_s28  ;;  %p506_p7 = scmp.lt.s32.totalorder %s500_s28, %s500_s28 }
  0x2d   :  { %p507_p8 = por %p506_p7, %p505_p6 }
  0x2f   :  { %p508_p9 = pnand %p507_p8, %p501_p5 }
  0x31   :  { %511 = shalt.err (!%p508_p9)
}
  0x32   :  { %50 = dma.hbm_to_vmem [thread:$0]  %s653_s3, 1024, %s45_s19, [#allocation6], %s542_s30, %s542_s30, %s543_s6  }
  0x33   :  { %534 = dma.done.wait [#allocation3], 128  }
  0x34   :  { %535 = vsyncadd [#allocation3], 4294967168 }
  0x35   :  { %536 = dma.done.wait [#allocation6], 2048  }
  0x36   :  { %537 = vsyncadd [#allocation6], 4294965248  ;;  %v545_v0 = vmov 0.0   ;;  %vm546_vm0 = vmmov 0   ;;  %v421_v1 = vld [vmem:[#allocation5] sm:$0xff]   ;;  %v422_v2 = vld [vmem:[#allocation5 + $0x8] sm:$0xff]  }
  0x37   :  { %371 = vmatprep.subr.bf16.mxu0 %v545_v0  ;;  %387 = vmatprep.mubr.msk.bf16.mxu0 %vm546_vm0, %v545_v0  ;;  %v423_v3 = vld [vmem:[#allocation5 + $0x10] sm:$0xff]   ;;  %v430_v4 = vld [vmem:[#allocation7] sm:$0xff]   ;;  %v424_v5 = vld [vmem:[#allocation5 + $0x18] sm:$0xff]  }
  0x38   :  { %391 = vmatprep.subr.bf16.mxu1 %v545_v0  ;;  %407 = vmatprep.mubr.msk.bf16.mxu1 %vm546_vm0, %v545_v0  ;;  %v431_v6 = vld [vmem:[#allocation7 + $0x8] sm:$0xff]   ;;  %v425_v7 = vld [vmem:[#allocation5 + $0x20] sm:$0xff]   ;;  %v432_v8 = vld [vmem:[#allocation7 + $0x10] sm:$0xff]  }
  0x39   :  { %372 = vmatpush3.bf16.msra.mxu0 %v421_v1  ;;  %392 = vmatpush3.bf16.msra.mxu1 %v430_v4  ;;  %v426_v9 = vld [vmem:[#allocation5 + $0x28] sm:$0xff]   ;;  %v433_v10 = vld [vmem:[#allocation7 + $0x18] sm:$0xff]   ;;  %v427_v11 = vld [vmem:[#allocation5 + $0x30] sm:$0xff]  }
  0x3a   :  { %373 = vmatprep.subr.bf16.mxu0 %v545_v0  ;;  %393 = vmatprep.subr.bf16.mxu1 %v545_v0  ;;  %v434_v12 = vld [vmem:[#allocation7 + $0x20] sm:$0xff]   ;;  %v428_v13 = vld [vmem:[#allocation5 + $0x38] sm:$0xff]   ;;  %v435_v14 = vld [vmem:[#allocation7 + $0x28] sm:$0xff]  }
  0x3b   :  { %v429_v15 = vld [vmem:[#allocation2] sm:$0xff]   ;;  %v436_v16 = vld [vmem:[#allocation7 + $0x30] sm:$0xff]  }
  0x3c   :  { %v437_v17 = vld [vmem:[#allocation7 + $0x38] sm:$0xff]  }
  0x3d   :  { %374 = vmatpush3.bf16.msra.mxu0 %v422_v2  ;;  %394 = vmatpush3.bf16.msra.mxu1 %v431_v6  ;;  %v334_v18 = vld [vmem:[%s652_s2] ss:$0 sm:$0xff]  ;;  %s547_s2 = smov [#allocation8]  }
  0x3e   :  { %375 = vmatprep.subr.bf16.mxu0 %v545_v0  ;;  %395 = vmatprep.subr.bf16.mxu1 %v545_v0  ;;  %v344_v26 = vld [vmem:[%s654_s4] ss:$0 sm:$0xff]  ;;  %s321_s4 = sshll.u32 %s547_s2, 4  ;;  %s322_s4 = int_to_ptr.vmem [resolvable:$true] %s321_s4 }
  0x3f   :  { %s512_s7 = scalar_lea.vmem %s322_s4, 256  ;;  %p517_p11 = scmp.lt.s32.totalorder %s322_s4, %s322_s4 }
  0x40   :  { %p513_p10 = scmp.ne.s32.totalorder %s322_s4, %s512_s7  ;;  %p518_p12 = scmp.lt.s32.totalorder %s512_s7, %s512_s7 }
  0x41   :  { %376 = vmatpush3.bf16.msra.mxu0 %v423_v3  ;;  %396 = vmatpush3.bf16.msra.mxu1 %v432_v8 }
  0x42   :  { %377 = vmatprep.subr.bf16.mxu0 %v545_v0  ;;  %397 = vmatprep.subr.bf16.mxu1 %v545_v0  ;;  %p519_p13 = por %p518_p12, %p517_p11 }
  0x44   :  { %p520_p0 = pnand %p519_p13, %p513_p10 }
  0x45   :  { %378 = vmatpush3.bf16.msra.mxu0 %v424_v5  ;;  %398 = vmatpush3.bf16.msra.mxu1 %v433_v10 }
  0x46   :  { %379 = vmatprep.subr.bf16.mxu0 %v545_v0  ;;  %399 = vmatprep.subr.bf16.mxu1 %v545_v0 }
  0x49   :  { %380 = vmatpush3.bf16.msra.mxu0 %v425_v7  ;;  %400 = vmatpush3.bf16.msra.mxu1 %v434_v12 }
  0x4a   :  { %381 = vmatprep.subr.bf16.mxu0 %v545_v0  ;;  %401 = vmatprep.subr.bf16.mxu1 %v545_v0 }
  0x4d   :  { %382 = vmatpush3.bf16.msra.mxu0 %v426_v9  ;;  %402 = vmatpush3.bf16.msra.mxu1 %v435_v14 }
  0x4e   :  { %383 = vmatprep.subr.bf16.mxu0 %v545_v0  ;;  %403 = vmatprep.subr.bf16.mxu1 %v545_v0 }
  0x51   :  { %384 = vmatpush3.bf16.msra.mxu0 %v427_v11  ;;  %404 = vmatpush3.bf16.msra.mxu1 %v436_v16 }
  0x52   :  { %385 = vmatprep.subr.bf16.mxu0 %v545_v0  ;;  %405 = vmatprep.subr.bf16.mxu1 %v545_v0 }
  0x55   :  { %386 = vmatpush3.bf16.msra.mxu0 %v428_v13  ;;  %406 = vmatpush3.bf16.msra.mxu1 %v437_v17 }
  0x58   :  { %388 = vmatmul.mubr.bf16.vlgmr.msra.gmra.mrb[0].mxu0 %v429_v15 }
 0x12b   :  { %v176_v19 = vpop.f32.mrb[0].mxu0 }
 0x12c   :  { %v389_v20 = vpop.f32.mrb[1].mxu0  ;;  %v177_v22 = vadd.f32 %v334_v18, %v176_v19 }
 0x12d   :  { %v179_v21 = vpop.f32.mrb[2].mxu0 }
 0x12e   :  { %v180_v23 = vadd.f32 %v334_v18, %v179_v21  ;;  %v390_v24 = vpop.f32.mrb[3].mxu0 }
 0x130   :  { %v183_v25 = vpack.c.bf16 %v180_v23, %v177_v22 }
 0x132   :  { %408 = vmatmul.mubr.bf16.vlgmr.msra.gmra.mrb[0].mxu1 %v183_v25 }
 0x205   :  { %v289_v27 = vpop.f32.mrb[0].mxu1 }
 0x206   :  { %v290_v28 = vadd.f32 %v344_v26, %v289_v27  ;;  %v409_v29 = vpop.f32.mrb[1].mxu1 }
 0x207   :  { %v292_v30 = vpop.f32.mrb[2].mxu1 }
 0x208   :  { %296 = vmax.xlane.f32.xlu0 %v290_v28  ;;  %v410_v31 = vpop.f32.mrb[3].mxu1  ;;  %v293_v32 = vadd.f32 %v344_v26, %v292_v30 }
 0x20c   :  { %298 = vmax.xlane.f32.xlu0 %v293_v32 }
 0x295   :  { %v297_v33 = vpop.xlane.xlu0 %296 }
 0x296   :  { %v300_v34 = vsub.f32 %v290_v28, %v297_v33 }
 0x298   :  { %v302_v35 = vmul.f32 1.442695, %v300_v34 }
 0x299   :  { %v299_v36 = vpop.xlane.xlu0 %298 }
 0x29a   :  { %438 = vpow2.f32 %v302_v35  ;;  %v301_v37 = vsub.f32 %v293_v32, %v299_v36 }
 0x29c   :  { %v304_v38 = vmul.f32 1.442695, %v301_v37 }
 0x29e   :  { %440 = vpow2.f32 %v304_v38 }
 0x2a4   :  { %v439_v39 = vpop.eup %438 }
 0x2a5   :  { %306 = vadd.xlane.f32.xlu1 %v439_v39 }
 0x2a8   :  { %v441_v40 = vpop.eup %440 }
 0x2a9   :  { %308 = vadd.xlane.f32.xlu1 %v441_v40 }
 0x332   :  { %v307_v41 = vpop.xlane.xlu1 %306 }
 0x333   :  { %442 = vrcp.f32 %v307_v41 }
 0x336   :  { %v309_v42 = vpop.xlane.xlu1 %308 }
 0x337   :  { %444 = vrcp.f32 %v309_v42 }
 0x33d   :  { %v443_v43 = vpop.eup %442 }
 0x33e   :  { %v312_v44 = vmul.f32 %v443_v43, %v439_v39 }
 0x340   :  { %314 = vst [vmem:[#allocation8] sm:$0xff] %v312_v44 }
 0x341   :  { %v445_v45 = vpop.eup %444 }
 0x342   :  { %v313_v46 = vmul.f32 %v445_v45, %v441_v40 }
 0x344   :  { %315 = vst [vmem:[#allocation8 + $0x8] sm:$0xff] %v313_v46 }
 0x345   :  { %523 = shalt.err (!%p520_p0)
}
 0x346   :  { %s524_s10 = scalar_lea.hbm %s655_s5, 256 }
 0x347   :  { %p525_p1 = scmp.ne.s32.totalorder %s655_s5, %s524_s10  ;;  %p528_p2 = scmp.lt.u32.totalorder %s524_s10, %s655_s5 }
 0x349   :  { %p530_p3 = pnand %p528_p2, %p525_p1 }
 0x34b   :  { %533 = shalt.err (!%p530_p3)
}
 0x34c   :  { %s548_s15 = smov 128   ;;  %s549_s16 = smov 8  }
 0x34d   :  { %327 = dma.vmem_to_hbm [thread:$0]  %s322_s4, 256, %s655_s5, [#allocation4], %s548_s15, %s548_s15, %s549_s16  }
 0x34e   :  { %538 = dma.done.wait [#allocation4], 256  }
 0x34f   :  { %539 = vsyncadd [#allocation4], 4294967040 }
 0x350   :  { %331 = vsyncpa [#allocation3], 1 }
 0x351   :  { %332 = vsyncpa [#allocation6], 1 }
 0x352   :  { %333 = vsyncpa [#allocation4], 1 }

</bundles_post_ra>
